<compile_context>
chip_gen: v5e
topology: v5e:2x2
jax: 0.10.0
libtpu: 0.0.40
codegen_flags: <defaults>
</compile_context>

<pallas_src>
import jax
import jax.numpy as jnp
from jax.experimental import pallas as pl
from jax.experimental.pallas import tpu as pltpu


# ----------------------------------------------------------------------------
# Pallas kernel: K-tiled fc1 accumulation + fused (bias, ReLU, fc2, bias, ReLU)
# ----------------------------------------------------------------------------
def head_kernel(x_ref, w1_ref, b1_ref, w2_ref, b2_ref, o_ref, acc_ref):
    # x_ref : [B_pad, TK]        (bf16)   -- K tile of flattened hidden states
    # w1_ref: [TK, FC1]          (bf16)   -- streamed W1 tile
    # b1_ref: [1, FC1]  w2_ref: [FC1, FC2]  b2_ref: [1, FC2]   (f32, resident)
    # o_ref : [B_pad, FC2]       (f32)
    # acc_ref: [B_pad, FC1]      (f32 scratch accumulator)
    k = pl.program_id(0)

    @pl.when(k == 0)
    def _init():
        acc_ref[...] = jnp.zeros_like(acc_ref)

    # fc1 partial product for this K tile (bf16 inputs, f32 accumulation on MXU).
    acc_ref[...] += jnp.dot(
        x_ref[...], w1_ref[...], preferred_element_type=jnp.float32
    )

    @pl.when(k == pl.num_programs(0) - 1)
    def _finalize():
        h = jnp.maximum(acc_ref[...] + b1_ref[...], 0.0)              # ReLU(fc1)
        y = jnp.dot(h, w2_ref[...], preferred_element_type=jnp.float32) + b2_ref[...]
        o_ref[...] = jnp.maximum(y, 0.0).astype(o_ref.dtype)          # ReLU(fc2)


def _pick_tk(d_in, max_tk=6144):
    """Largest multiple of 128 (<= max_tk) that exactly divides d_in."""
    best = 128
    tk = 128
    while tk <= min(d_in, max_tk):
        if d_in % tk == 0:
            best = tk
        tk += 128
    return best


def classification_head(hidden_states, w1, b1, w2, b2):
    """hidden_states: [B, T, H] f32 -> [B, fc2_out] f32."""
    B = hidden_states.shape[0]
    x = hidden_states.reshape(B, -1)            # torch .view(B, -1)
    d_in = x.shape[1]
    fc1_out = w1.shape[1]
    fc2_out = w2.shape[1]
    assert w1.shape[0] == d_in and w2.shape[0] == fc1_out

    # Pad batch to a full f32 sublane (>= 8 rows) to avoid masked loads/stores.
    b_pad = max(8, ((B + 7) // 8) * 8)
    if b_pad != B:
        x = jnp.pad(x, ((0, b_pad - B), (0, 0)))

    # Pad the contraction dim to a multiple of 128 (zero padding is exact).
    if d_in % 128 != 0:
        pad = 128 - (d_in % 128)
        x = jnp.pad(x, ((0, 0), (0, pad)))
        w1 = jnp.pad(w1, ((0, pad), (0, 0)))
        d_in += pad

    tk = _pick_tk(d_in)
    n_k = d_in // tk

    # bf16 stream for the bandwidth-bound fc1; tiny fc2 stays in f32.
    x_bf16 = x.astype(jnp.bfloat16)
    w1_bf16 = w1.astype(jnp.bfloat16)
    b1_2d = b1.reshape(1, -1).astype(jnp.float32)
    w2_f32 = w2.astype(jnp.float32)
    b2_2d = b2.reshape(1, -1).astype(jnp.float32)

    out = pl.pallas_call(
        head_kernel,
        out_shape=jax.ShapeDtypeStruct((b_pad, fc2_out), jnp.float32),
        grid_spec=pltpu.PrefetchScalarGridSpec(
            num_scalar_prefetch=0,
            grid=(n_k,),
            in_specs=[
                pl.BlockSpec((b_pad, tk), lambda k: (0, k)),         # x K-tile
                pl.BlockSpec((tk, fc1_out), lambda k: (k, 0)),       # W1 K-tile (streamed)
                pl.BlockSpec((1, fc1_out), lambda k: (0, 0)),        # b1 (resident)
                pl.BlockSpec((fc1_out, fc2_out), lambda k: (0, 0)),  # W2 (resident)
                pl.BlockSpec((1, fc2_out), lambda k: (0, 0)),        # b2 (resident)
            ],
            out_specs=pl.BlockSpec((b_pad, fc2_out), lambda k: (0, 0)),
            scratch_shapes=[pltpu.VMEM((b_pad, fc1_out), jnp.float32)],
        ),
        compiler_params=pltpu.CompilerParams(
            dimension_semantics=("arbitrary",),       # K is a reduction axis
            vmem_limit_bytes=48 * 1024 * 1024,        # fits v5e/v6e/v7x budgets
        ),
    )(x_bf16, w1_bf16, b1_2d, w2_f32, b2_2d)

    return out[:B]


# ----------------------------------------------------------------------------
# Deterministic parameter init (mimics nn.Linear uniform(-1/sqrt(fan_in), ...))
# ----------------------------------------------------------------------------
def init_linear(key, fan_in, fan_out):
    kw, kb = jax.random.split(key)
    bound = 1.0 / jnp.sqrt(jnp.float32(fan_in))
    w = jax.random.uniform(kw, (fan_in, fan_out), jnp.float32, -bound, bound)
    b = jax.random.uniform(kb, (fan_out,), jnp.float32, -bound, bound)
    return w, b


if __name__ == "__main__":
    # Small shapes consistent with the forward pass:
    # real model: B x 964 x 768 hidden states -> fc1(964*768, 512) -> fc2(512, 256)
    # scaled    : B=2, T=8 frames, H=32 hidden -> fc1(256, 512)    -> fc2(512, 256)
    B, T, H = 2, 8, 32
    D_IN = T * H
    FC1_OUT, FC2_OUT = 512, 256

    key = jax.random.PRNGKey(0)
    k_x, k_fc1, k_fc2 = jax.random.split(key, 3)

    hidden_states = jax.random.normal(k_x, (B, T, H), jnp.float32)
    w1, b1 = init_linear(k_fc1, D_IN, FC1_OUT)
    w2, b2 = init_linear(k_fc2, FC1_OUT, FC2_OUT)

    out = classification_head(hidden_states, w1, b1, w2, b2)
    out = jax.block_until_ready(out)

    # Reference in plain JAX: same math, with fc1 inputs rounded to bf16 like
    # the kernel's streamed matmul (accumulation stays f32 in both).
    x_ref = hidden_states.reshape(B, -1)
    x_b = x_ref.astype(jnp.bfloat16).astype(jnp.float32)
    w1_b = w1.astype(jnp.bfloat16).astype(jnp.float32)
    h_ref = jnp.maximum(x_b @ w1_b + b1, 0.0)
    ref = jnp.maximum(h_ref @ w2 + b2, 0.0)

    assert out.shape == (B, FC2_OUT)
    assert jnp.allclose(out, ref, atol=2e-3, rtol=2e-3), float(
        jnp.max(jnp.abs(out - ref))
    )

    print("KERNEL_OK")
</pallas_src>

<mosaic_0001>
module attributes {stable_mosaic.version = 11 : i64} {
  func.func @head_kernel(%arg0: i32, %arg1: memref<8x256xbf16, #tpu.memory_space<vmem>>, %arg2: memref<256x512xbf16, #tpu.memory_space<vmem>>, %arg3: memref<1x512xf32, #tpu.memory_space<vmem>>, %arg4: memref<512x256xf32, #tpu.memory_space<vmem>>, %arg5: memref<1x256xf32, #tpu.memory_space<vmem>>, %arg6: memref<8x256xf32, #tpu.memory_space<vmem>>, %arg7: memref<8x512xf32, #tpu.memory_space<vmem>>) attributes {dimension_semantics = [#tpu.dimension_semantics<arbitrary>], iteration_bounds = array<i64: 1>, scalar_prefetch = 0 : i64, scratch_operands = 1 : i64, tpu.core_type = #tpu.core_type<tc>, window_params = [{transform_indices = @transform_0, window_bounds = array<i64: 8, 256>}, {transform_indices = @transform_1, window_bounds = array<i64: 256, 512>}, {pipeline_mode = #tpu.pipeline_mode<synchronous>, transform_indices = @transform_2, window_bounds = array<i64: 1, 512>}, {pipeline_mode = #tpu.pipeline_mode<synchronous>, transform_indices = @transform_3, window_bounds = array<i64: 512, 256>}, {pipeline_mode = #tpu.pipeline_mode<synchronous>, transform_indices = @transform_4, window_bounds = array<i64: 1, 256>}, {pipeline_mode = #tpu.pipeline_mode<synchronous>, transform_indices = @transform_5, window_bounds = array<i64: 8, 256>}]} {
    %c0_i32 = arith.constant 0 : i32
    %0 = arith.cmpi eq, %arg0, %c0_i32 : i32
    %1 = arith.extui %0 : i1 to i32
    %c0_i32_0 = arith.constant 0 : i32
    %2 = arith.cmpi ne, %1, %c0_i32_0 : i32
    scf.if %2 {
      %cst_10 = arith.constant 0.000000e+00 : f32
      %12 = vector.broadcast %cst_10 : f32 to vector<8x512xf32>
      %c0_11 = arith.constant 0 : index
      %c0_12 = arith.constant 0 : index
      %13 = vector.load %arg7[%c0_11, %c0_12] : memref<8x512xf32, #tpu.memory_space<vmem>>, vector<8x512xf32>
      tpu.vector_store %arg7[%c0_11, %c0_12], %12 {strides = array<i32>} : memref<8x512xf32, #tpu.memory_space<vmem>>, vector<8x512xf32>,
    } else {
    }
    %c0 = arith.constant 0 : index
    %c0_1 = arith.constant 0 : index
    %3 = vector.load %arg7[%c0, %c0_1] : memref<8x512xf32, #tpu.memory_space<vmem>>, vector<8x512xf32>
    %c0_2 = arith.constant 0 : index
    %c0_3 = arith.constant 0 : index
    %4 = vector.load %arg1[%c0_2, %c0_3] : memref<8x256xbf16, #tpu.memory_space<vmem>>, vector<8x256xbf16>
    %c0_4 = arith.constant 0 : index
    %c0_5 = arith.constant 0 : index
    %5 = vector.load %arg2[%c0_4, %c0_5] : memref<256x512xbf16, #tpu.memory_space<vmem>>, vector<256x512xbf16>
    %cst = arith.constant dense<0.000000e+00> : vector<8x512xf32>
    %6 = tpu.matmul %4, %5, %cst {dimension_numbers = #tpu.dot_dimension_numbers<[1], [0], [0], [1], [0, 0, 1, 1], [], []>} : vector<8x256xbf16>, vector<256x512xbf16>, vector<8x512xf32> -> vector<8x512xf32>
    %7 = arith.addf %3, %6 : vector<8x512xf32>
    %c0_6 = arith.constant 0 : index
    %c0_7 = arith.constant 0 : index
    %8 = vector.load %arg7[%c0_6, %c0_7] : memref<8x512xf32, #tpu.memory_space<vmem>>, vector<8x512xf32>
    tpu.vector_store %arg7[%c0_6, %c0_7], %7 {strides = array<i32>} : memref<8x512xf32, #tpu.memory_space<vmem>>, vector<8x512xf32>,
    %c0_i32_8 = arith.constant 0 : i32
    %9 = arith.cmpi eq, %arg0, %c0_i32_8 : i32
    %10 = arith.extui %9 : i1 to i32
    %c0_i32_9 = arith.constant 0 : i32
    %11 = arith.cmpi ne, %10, %c0_i32_9 : i32
    scf.if %11 {
      %c0_10 = arith.constant 0 : index
      %c0_11 = arith.constant 0 : index
      %12 = vector.load %arg7[%c0_10, %c0_11] : memref<8x512xf32, #tpu.memory_space<vmem>>, vector<8x512xf32>
      %c0_12 = arith.constant 0 : index
      %c0_13 = arith.constant 0 : index
      %13 = vector.load %arg3[%c0_12, %c0_13] : memref<1x512xf32, #tpu.memory_space<vmem>>, vector<1x512xf32>
      %14 = vector.broadcast %13 : vector<1x512xf32> to vector<8x512xf32>
      %15 = arith.addf %12, %14 : vector<8x512xf32>
      %cst_14 = arith.constant 0.000000e+00 : f32
      %16 = vector.broadcast %cst_14 : f32 to vector<8x512xf32>
      %17 = arith.maximumf %15, %16 : vector<8x512xf32>
      %c0_15 = arith.constant 0 : index
      %c0_16 = arith.constant 0 : index
      %18 = vector.load %arg4[%c0_15, %c0_16] : memref<512x256xf32, #tpu.memory_space<vmem>>, vector<512x256xf32>
      %cst_17 = arith.constant dense<0.000000e+00> : vector<8x256xf32>
      %19 = tpu.matmul %17, %18, %cst_17 {dimension_numbers = #tpu.dot_dimension_numbers<[1], [0], [0], [1], [0, 0, 1, 1], [], []>} : vector<8x512xf32>, vector<512x256xf32>, vector<8x256xf32> -> vector<8x256xf32>
      %c0_18 = arith.constant 0 : index
      %c0_19 = arith.constant 0 : index
      %20 = vector.load %arg5[%c0_18, %c0_19] : memref<1x256xf32, #tpu.memory_space<vmem>>, vector<1x256xf32>
      %21 = vector.broadcast %20 : vector<1x256xf32> to vector<8x256xf32>
      %22 = arith.addf %19, %21 : vector<8x256xf32>
      %cst_20 = arith.constant 0.000000e+00 : f32
      %23 = vector.broadcast %cst_20 : f32 to vector<8x256xf32>
      %24 = arith.maximumf %22, %23 : vector<8x256xf32>
      %c0_21 = arith.constant 0 : index
      %c0_22 = arith.constant 0 : index
      %25 = vector.load %arg6[%c0_21, %c0_22] : memref<8x256xf32, #tpu.memory_space<vmem>>, vector<8x256xf32>
      tpu.vector_store %arg6[%c0_21, %c0_22], %24 {strides = array<i32>} : memref<8x256xf32, #tpu.memory_space<vmem>>, vector<8x256xf32>,
    } else {
    }
    return
  }
  func.func @transform_0(%arg0: i32) -> (i32, i32) {
    %c0_i32 = arith.constant 0 : i32
    %c0_i32_0 = arith.constant 0 : i32
    return %c0_i32, %arg0 : i32, i32
  }
  func.func @transform_1(%arg0: i32) -> (i32, i32) {
    %c0_i32 = arith.constant 0 : i32
    %c0_i32_0 = arith.constant 0 : i32
    return %arg0, %c0_i32 : i32, i32
  }
  func.func @transform_2(%arg0: i32) -> (i32, i32) {
    %c0_i32 = arith.constant 0 : i32
    %c0_i32_0 = arith.constant 0 : i32
    %c0_i32_1 = arith.constant 0 : i32
    return %c0_i32, %c0_i32_0 : i32, i32
  }
  func.func @transform_3(%arg0: i32) -> (i32, i32) {
    %c0_i32 = arith.constant 0 : i32
    %c0_i32_0 = arith.constant 0 : i32
    %c0_i32_1 = arith.constant 0 : i32
    return %c0_i32, %c0_i32_0 : i32, i32
  }
  func.func @transform_4(%arg0: i32) -> (i32, i32) {
    %c0_i32 = arith.constant 0 : i32
    %c0_i32_0 = arith.constant 0 : i32
    %c0_i32_1 = arith.constant 0 : i32
    return %c0_i32, %c0_i32_0 : i32, i32
  }
  func.func @transform_5(%arg0: i32) -> (i32, i32) {
    %c0_i32 = arith.constant 0 : i32
    %c0_i32_0 = arith.constant 0 : i32
    %c0_i32_1 = arith.constant 0 : i32
    return %c0_i32, %c0_i32_0 : i32, i32
  }
}

</mosaic_0001>

<bundles_post_ra>
// kernel: tpu_custom_call.1
= control target key start
LH: loop header
LB: loop body
LE: loop exit
PB: predicated region body
PF: predicated region fallthrough
CT: control target
= control target key end

     0   :  { %10 = vsyncpa [#allocation4], 0  ;;  %s1466_s0 = inlined_call_operand.hbm [shape: bf16[8,256], index: 0, kind: input, shape index: {}]   ;;  %s1467_s1 = inlined_call_operand.hbm [shape: bf16[256,512], index: 1, kind: input, shape index: {}]   ;;  %s1468_s2 = inlined_call_operand.hbm [shape: f32[1,512], index: 2, kind: input, shape index: {}]   ;;  %s1469_s3 = inlined_call_operand.hbm [shape: f32[512,256], index: 3, kind: input, shape index: {}]   ;;  %s1470_s4 = inlined_call_operand.vmem [shape: f32[1,256], index: 4, kind: input, shape index: {}]   ;;  %s1471_s5 = inlined_call_operand.hbm [shape: f32[8,256], index: 5, kind: output, shape index: {}]  }
   0x1   :  { %11 = vsyncpa [#allocation7], 0 }
   0x2   :  { %12 = vsyncpa [#allocation10], 0  ;;  %s29_s20 = sshll.u32 %s1467_s1, 4  ;;  %s30_s20 = int_to_ptr.hbm [resolvable:$true] %s29_s20 }
   0x3   :  { %13 = vsyncpa [#allocation5], 0  ;;  %s1393_s21 = smov [#allocation6]   ;;  %s19_s25 = sshll.u32 %s1466_s0, 4  ;;  %s20_s25 = int_to_ptr.hbm [resolvable:$true] %s19_s25 }
   0x4   :  { %s31_s22 = sshll.u32 %s1393_s21, 4  ;;  %s1394_s26 = smov 256   ;;  %s32_s22 = int_to_ptr.vmem [resolvable:$true] %s31_s22 }
   0x5   :  { %s1395_s27 = smov 16   ;;  %s1396_s28 = smov [#allocation3]  }
   0x6   :  { %37 = dma.hbm_to_vmem [thread:$0]  %s30_s20, 8192, %s32_s22, [#allocation7], %s1394_s26, %s1394_s26, %s1395_s27  }
   0x7   :  { %s21_s29 = sshll.u32 %s1396_s28, 4  ;;  %s43_s7 = sshll.u32 %s1468_s2, 4  ;;  %s22_s29 = int_to_ptr.vmem [resolvable:$true] %s21_s29  ;;  %s44_s7 = int_to_ptr.hbm [resolvable:$true] %s43_s7 }
   0x8   :  { %24 = dma.hbm_to_vmem [thread:$0]  %s20_s25, 128, %s22_s29, [#allocation4]  }
   0x9   :  { %s53_s9 = sshll.u32 %s1469_s3, 4  ;;  %s1397_s10 = smov [#allocation8]   ;;  %s54_s9 = int_to_ptr.hbm [resolvable:$true] %s53_s9 }
   0xa   :  { %s45_s11 = sshll.u32 %s1397_s10, 4  ;;  %s1398_s0 = smov [#allocation9]   ;;  %s46_s11 = int_to_ptr.vmem [resolvable:$true] %s45_s11 }
   0xb   :  { %48 = dma.hbm_to_vmem [thread:$0]  %s44_s7, 64, %s46_s11, [#allocation7]  }
   0xc   :  { %s55_s12 = sshll.u32 %s1398_s0, 4  ;;  %s56_s12 = int_to_ptr.vmem [resolvable:$true] %s55_s12 }
   0xd   :  { %61 = dma.hbm_to_vmem [thread:$0]  %s54_s9, 16384, %s56_s12, [#allocation10], %s1394_s26, %s1394_s26, %s1395_s27  }
   0xe   :  { %1385 = dma.done.wait [#allocation4], 128  }
   0xf   :  { %1386 = vsyncadd [#allocation4], 4294967168 }
  0x10   :  { %1387 = dma.done.wait [#allocation7], 8256  }
  0x11   :  { %1388 = vsyncadd [#allocation7], 4294959040 }
  0x12   :  { %1389 = dma.done.wait [#allocation10], 16384  }
  0x13   :  { %1390 = vsyncadd [#allocation10], 4294950912  ;;  %v1052_v0 = vld [vmem:[#allocation6 + $0xe0] sm:$0xf]  ;;  %v1224_v1 = vld [vmem:[#allocation6 + $0xec] sm:$0xf0] }
  0x14   :  { %v1180_v2 = vld [vmem:[#allocation6 + $0x1e0] sm:$0xf]  ;;  %v1053_v3 = vor.u32 %v1224_v1, %v1052_v0  ;;  %v1256_v4 = vld [vmem:[#allocation6 + $0x1ec] sm:$0xf0]  ;;  %v1222_v5 = vld [vmem:[#allocation6 + $0xe4] sm:$0xf] }
  0x15   :  { %v1054_v6 = vld [vmem:[#allocation6 + $0xf0] sm:$0xf0]  ;;  %v1181_v7 = vor.u32 %v1256_v4, %v1180_v2  ;;  %v1254_v9 = vld [vmem:[#allocation6 + $0x1e4] sm:$0xf]  ;;  %v1036_v11 = vld [vmem:[#allocation6 + $0xc0] sm:$0xf] }
  0x16   :  { %v1057_v8 = vor.u32 %v1222_v5, %v1054_v6  ;;  %v1182_v10 = vld [vmem:[#allocation6 + $0x1f0] sm:$0xf0]  ;;  %484 = vmatpush.bf16.msra.mxu0 %v1053_v3  ;;  %v1220_v13 = vld [vmem:[#allocation6 + $0xcc] sm:$0xf0]  ;;  %v1164_v14 = vld [vmem:[#allocation6 + $0x1c0] sm:$0xf] }
  0x17   :  { %v1185_v12 = vor.u32 %v1254_v9, %v1182_v10  ;;  %v1252_v15 = vld [vmem:[#allocation6 + $0x1cc] sm:$0xf0]  ;;  %497 = vmatpush.bf16.msra.mxu1 %v1181_v7  ;;  %v1037_v16 = vor.u32 %v1220_v13, %v1036_v11  ;;  %v1218_v18 = vld [vmem:[#allocation6 + $0xc4] sm:$0xf]  ;;  %v1038_v19 = vld [vmem:[#allocation6 + $0xd0] sm:$0xf0] }
  0x18   :  { %510 = vmatpush.bf16.msra.mxu2 %v1057_v8  ;;  %v1165_v17 = vor.u32 %v1252_v15, %v1164_v14  ;;  %v1250_v20 = vld [vmem:[#allocation6 + $0x1c4] sm:$0xf]  ;;  %v1041_v21 = vor.u32 %v1218_v18, %v1038_v19  ;;  %v1166_v22 = vld [vmem:[#allocation6 + $0x1d0] sm:$0xf0]  ;;  %v1020_v23 = vld [vmem:[#allocation6 + $0xa0] sm:$0xf] }
  0x19   :  { %523 = vmatpush.bf16.msra.mxu3 %v1185_v12  ;;  %v1216_v24 = vld [vmem:[#allocation6 + $0xac] sm:$0xf0]  ;;  %v1169_v25 = vor.u32 %v1250_v20, %v1166_v22  ;;  %v1148_v26 = vld [vmem:[#allocation6 + $0x1a0] sm:$0xf]  ;;  %v1214_v28 = vld [vmem:[#allocation6 + $0xa4] sm:$0xf] }
  0x1a   :  { %v1248_v27 = vld [vmem:[#allocation6 + $0x1ac] sm:$0xf0]  ;;  %485 = vmatpush.bf16.msra.mxu0 %v1037_v16  ;;  %v1021_v29 = vor.u32 %v1216_v24, %v1020_v23  ;;  %v1022_v30 = vld [vmem:[#allocation6 + $0xb0] sm:$0xf0]  ;;  %v1246_v31 = vld [vmem:[#allocation6 + $0x1a4] sm:$0xf] }
  0x1b   :  { %v1150_v32 = vld [vmem:[#allocation6 + $0x1b0] sm:$0xf0]  ;;  %498 = vmatpush.bf16.msra.mxu1 %v1165_v17  ;;  %v1149_v33 = vor.u32 %v1248_v27, %v1148_v26  ;;  %v1025_v34 = vor.u32 %v1214_v28, %v1022_v30  ;;  %v1004_v35 = vld [vmem:[#allocation6 + $0x80] sm:$0xf]  ;;  %v1212_v36 = vld [vmem:[#allocation6 + $0x8c] sm:$0xf0] }
  0x1c   :  { %511 = vmatpush.bf16.msra.mxu2 %v1041_v21  ;;  %v1132_v37 = vld [vmem:[#allocation6 + $0x180] sm:$0xf]  ;;  %v1153_v38 = vor.u32 %v1246_v31, %v1150_v32  ;;  %v1244_v39 = vld [vmem:[#allocation6 + $0x18c] sm:$0xf0]  ;;  %v1210_v40 = vld [vmem:[#allocation6 + $0x84] sm:$0xf]  ;;  %v1005_v44 = vor.u32 %v1212_v36, %v1004_v35 }
  0x1d   :  { %524 = vmatpush.bf16.msra.mxu3 %v1169_v25  ;;  %v1006_v41 = vld [vmem:[#allocation6 + $0x90] sm:$0xf0]  ;;  %v1242_v42 = vld [vmem:[#allocation6 + $0x184] sm:$0xf]  ;;  %v1133_v45 = vor.u32 %v1244_v39, %v1132_v37  ;;  %v988_v47 = vld [vmem:[#allocation6 + $0x60] sm:$0xf] }
  0x1e   :  { %v1134_v43 = vld [vmem:[#allocation6 + $0x190] sm:$0xf0]  ;;  %486 = vmatpush.bf16.msra.mxu0 %v1021_v29  ;;  %v1009_v46 = vor.u32 %v1210_v40, %v1006_v41  ;;  %v1208_v48 = vld [vmem:[#allocation6 + $0x6c] sm:$0xf0]  ;;  %v1116_v49 = vld [vmem:[#allocation6 + $0x160] sm:$0xf] }
  0x1f   :  { %499 = vmatpush.bf16.msra.mxu1 %v1149_v33  ;;  %v1137_v50 = vor.u32 %v1242_v42, %v1134_v43  ;;  %v1240_v51 = vld [vmem:[#allocation6 + $0x16c] sm:$0xf0]  ;;  %v1206_v52 = vld [vmem:[#allocation6 + $0x64] sm:$0xf]  ;;  %v990_v53 = vld [vmem:[#allocation6 + $0x70] sm:$0xf0]  ;;  %v989_v56 = vor.u32 %v1208_v48, %v988_v47 }
  0x20   :  { %512 = vmatpush.bf16.msra.mxu2 %v1025_v34  ;;  %v1238_v54 = vld [vmem:[#allocation6 + $0x164] sm:$0xf]  ;;  %v1118_v55 = vld [vmem:[#allocation6 + $0x170] sm:$0xf0]  ;;  %v1117_v57 = vor.u32 %v1240_v51, %v1116_v49  ;;  %v993_v58 = vor.u32 %v1206_v52, %v990_v53  ;;  %v972_v59 = vld [vmem:[#allocation6 + $0x40] sm:$0xf] }
  0x21   :  { %525 = vmatpush.bf16.msra.mxu3 %v1153_v38  ;;  %v1204_v60 = vld [vmem:[#allocation6 + $0x4c] sm:$0xf0]  ;;  %v1100_v61 = vld [vmem:[#allocation6 + $0x140] sm:$0xf]  ;;  %v1121_v62 = vor.u32 %v1238_v54, %v1118_v55  ;;  %v1202_v0 = vld [vmem:[#allocation6 + $0x44] sm:$0xf] }
  0x22   :  { %487 = vmatpush.bf16.msra.mxu0 %v1005_v44  ;;  %v1236_v63 = vld [vmem:[#allocation6 + $0x14c] sm:$0xf0]  ;;  %v974_v1 = vld [vmem:[#allocation6 + $0x50] sm:$0xf0]  ;;  %v1234_v2 = vld [vmem:[#allocation6 + $0x144] sm:$0xf]  ;;  %v973_v4 = vor.u32 %v1204_v60, %v972_v59 }
  0x23   :  { %500 = vmatpush.bf16.msra.mxu1 %v1133_v45  ;;  %v1102_v3 = vld [vmem:[#allocation6 + $0x150] sm:$0xf0]  ;;  %v1101_v5 = vor.u32 %v1236_v63, %v1100_v61  ;;  %v977_v6 = vor.u32 %v1202_v0, %v974_v1  ;;  %v956_v7 = vld [vmem:[#allocation6 + $0x20] sm:$0xf]  ;;  %v1200_v8 = vld [vmem:[#allocation6 + $0x2c] sm:$0xf0] }
  0x24   :  { %513 = vmatpush.bf16.msra.mxu2 %v1009_v46  ;;  %v1084_v9 = vld [vmem:[#allocation6 + $0x120] sm:$0xf]  ;;  %v1105_v10 = vor.u32 %v1234_v2, %v1102_v3  ;;  %v1232_v11 = vld [vmem:[#allocation6 + $0x12c] sm:$0xf0]  ;;  %v1198_v12 = vld [vmem:[#allocation6 + $0x24] sm:$0xf]  ;;  %v957_v16 = vor.u32 %v1200_v8, %v956_v7 }
  0x25   :  { %526 = vmatpush.bf16.msra.mxu3 %v1137_v50  ;;  %v958_v13 = vld [vmem:[#allocation6 + $0x30] sm:$0xf0]  ;;  %v1230_v14 = vld [vmem:[#allocation6 + $0x124] sm:$0xf]  ;;  %v940_v17 = vld [vmem:[#allocation6] sm:$0xf]  ;;  %v1085_v20 = vor.u32 %v1232_v11, %v1084_v9 }
  0x26   :  { %488 = vmatpush.bf16.msra.mxu0 %v989_v56  ;;  %v1086_v15 = vld [vmem:[#allocation6 + $0x130] sm:$0xf0]  ;;  %v1196_v18 = vld [vmem:[#allocation6 + $0xc] sm:$0xf0]  ;;  %v1068_v19 = vld [vmem:[#allocation6 + $0x100] sm:$0xf]  ;;  %v961_v21 = vor.u32 %v1198_v12, %v958_v13 }
  0x27   :  { %501 = vmatpush.bf16.msra.mxu1 %v1117_v57  ;;  %v1228_v22 = vld [vmem:[#allocation6 + $0x10c] sm:$0xf0]  ;;  %v1194_v23 = vld [vmem:[#allocation6 + $0x4] sm:$0xf]  ;;  %v942_v24 = vld [vmem:[#allocation6 + $0x10] sm:$0xf0]  ;;  %v1089_v25 = vor.u32 %v1230_v14, %v1086_v15  ;;  %v941_v32 = vor.u32 %v1196_v18, %v940_v17 }
  0x28   :  { %514 = vmatpush.bf16.msra.mxu2 %v993_v58  ;;  %v1226_v26 = vld [vmem:[#allocation6 + $0x104] sm:$0xf]  ;;  %v1070_v27 = vld [vmem:[#allocation6 + $0x110] sm:$0xf0]  ;;  %v1060_v28 = vld [vmem:[#allocation6 + $0xe8] sm:$0xf]  ;;  %v1069_v37 = vor.u32 %v1228_v22, %v1068_v19  ;;  %v945_v38 = vor.u32 %v1194_v23, %v942_v24 }
  0x29   :  { %527 = vmatpush.bf16.msra.mxu3 %v1121_v62  ;;  %v1225_v29 = vld [vmem:[#allocation6 + $0xf4] sm:$0xf0]  ;;  %v1188_v30 = vld [vmem:[#allocation6 + $0x1e8] sm:$0xf]  ;;  %v1223_v34 = vld [vmem:[#allocation6 + $0xec] sm:$0xf]  ;;  %v1073_v42 = vor.u32 %v1226_v26, %v1070_v27 }
  0x2a   :  { %489 = vmatpush.bf16.msra.mxu0 %v973_v4  ;;  %v92_v31 = vld [vmem:[#allocation3] sm:$0xff]  ;;  %v1255_v39 = vld [vmem:[#allocation6 + $0x1ec] sm:$0xf]  ;;  %v1061_v43 = vor.u32 %v1225_v29, %v1060_v28  ;;  %v1044_v46 = vld [vmem:[#allocation6 + $0xc8] sm:$0xf]  ;;  %s926_s16 = sshll.u32 %s1471_s5, 4  ;;  %s927_s16 = int_to_ptr.hbm [resolvable:$true] %s926_s16 }
  0x2b   :  { %502 = vmatpush.bf16.msra.mxu1 %v1101_v5  ;;  %v1257_v33 = vld [vmem:[#allocation6 + $0x1f4] sm:$0xf0]  ;;  %v1062_v35 = vld [vmem:[#allocation6 + $0xf8] sm:$0xf0]  ;;  %v158_v36 = vunpack.c.l.b16 %v92_v31  ;;  %v159_v41 = vunpack.c.h.b16 %v92_v31  ;;  %v1172_v48 = vld [vmem:[#allocation6 + $0x1c8] sm:$0xf] }
  0x2c   :  { %515 = vmatpush.bf16.msra.mxu2 %v977_v6  ;;  %v1190_v40 = vld [vmem:[#allocation6 + $0x1f8] sm:$0xf0]  ;;  %v1189_v44 = vor.u32 %v1257_v33, %v1188_v30  ;;  %v1065_v45 = vor.u32 %v1223_v34, %v1062_v35  ;;  %v1221_v47 = vld [vmem:[#allocation6 + $0xd4] sm:$0xf0]  ;;  %v1219_v51 = vld [vmem:[#allocation6 + $0xcc] sm:$0xf] }
  0x2d   :  { %528 = vmatpush.bf16.msra.mxu3 %v1105_v10  ;;  %v1193_v49 = vor.u32 %v1255_v39, %v1190_v40  ;;  %v1253_v50 = vld [vmem:[#allocation6 + $0x1d4] sm:$0xf0]  ;;  %v1046_v52 = vld [vmem:[#allocation6 + $0xd8] sm:$0xf0]  ;;  %v1442_v53 = vpack.c.b16 %v158_v36, %v158_v36  ;;  %v1251_v54 = vld [vmem:[#allocation6 + $0x1cc] sm:$0xf]  ;;  %v1444_v56 = vpack.c.b16 %v159_v41, %v159_v41  ;;  %v1045_v57 = vor.u32 %v1221_v47, %v1044_v46 }
  0x2e   :  { %490 = vmatpush.bf16.msra.mxu0 %v957_v16  ;;  %v1174_v55 = vld [vmem:[#allocation6 + $0x1d8] sm:$0xf0]  ;;  %v1173_v58 = vor.u32 %v1253_v50, %v1172_v48  ;;  %v1049_v59 = vor.u32 %v1219_v51, %v1046_v52  ;;  %v1028_v60 = vld [vmem:[#allocation6 + $0xa8] sm:$0xf]  ;;  %v1217_v61 = vld [vmem:[#allocation6 + $0xb4] sm:$0xf0] }
  0x2f   :  { %503 = vmatpush.bf16.msra.mxu1 %v1085_v20  ;;  %v1156_v62 = vld [vmem:[#allocation6 + $0x1a8] sm:$0xf]  ;;  %v1177_v63 = vor.u32 %v1251_v54, %v1174_v55  ;;  %v1249_v0 = vld [vmem:[#allocation6 + $0x1b4] sm:$0xf0]  ;;  %v1215_v1 = vld [vmem:[#allocation6 + $0xac] sm:$0xf]  ;;  %v1029_v5 = vor.u32 %v1217_v61, %v1028_v60 }
  0x30   :  { %516 = vmatpush.bf16.msra.mxu2 %v961_v21  ;;  %v1030_v2 = vld [vmem:[#allocation6 + $0xb8] sm:$0xf0]  ;;  %v1247_v3 = vld [vmem:[#allocation6 + $0x1ac] sm:$0xf]  ;;  %v1157_v6 = vor.u32 %v1249_v0, %v1156_v62  ;;  %v1012_v8 = vld [vmem:[#allocation6 + $0x88] sm:$0xf] }
  0x31   :  { %529 = vmatpush.bf16.msra.mxu3 %v1089_v25  ;;  %v1158_v4 = vld [vmem:[#allocation6 + $0x1b8] sm:$0xf0]  ;;  %v1033_v7 = vor.u32 %v1215_v1, %v1030_v2  ;;  %v1213_v9 = vld [vmem:[#allocation6 + $0x94] sm:$0xf0]  ;;  %v1140_v10 = vld [vmem:[#allocation6 + $0x188] sm:$0xf] }
  0x32   :  { %491 = vmatpush.bf16.msra.mxu0 %v941_v32  ;;  %v1161_v11 = vor.u32 %v1247_v3, %v1158_v4  ;;  %v1245_v12 = vld [vmem:[#allocation6 + $0x194] sm:$0xf0]  ;;  %v1211_v13 = vld [vmem:[#allocation6 + $0x8c] sm:$0xf]  ;;  %v1014_v14 = vld [vmem:[#allocation6 + $0x98] sm:$0xf0]  ;;  %v1013_v17 = vor.u32 %v1213_v9, %v1012_v8 }
  0x33   :  { %504 = vmatpush.bf16.msra.mxu1 %v1069_v37  ;;  %v1243_v15 = vld [vmem:[#allocation6 + $0x18c] sm:$0xf]  ;;  %v1142_v16 = vld [vmem:[#allocation6 + $0x198] sm:$0xf0]  ;;  %v1141_v18 = vor.u32 %v1245_v12, %v1140_v10  ;;  %v1017_v19 = vor.u32 %v1211_v13, %v1014_v14  ;;  %v996_v20 = vld [vmem:[#allocation6 + $0x68] sm:$0xf] }
  0x34   :  { %517 = vmatpush.bf16.msra.mxu2 %v945_v38  ;;  %v1209_v21 = vld [vmem:[#allocation6 + $0x74] sm:$0xf0]  ;;  %v1124_v22 = vld [vmem:[#allocation6 + $0x168] sm:$0xf]  ;;  %v1145_v23 = vor.u32 %v1243_v15, %v1142_v16  ;;  %v1207_v25 = vld [vmem:[#allocation6 + $0x6c] sm:$0xf] }
  0x35   :  { %530 = vmatpush.bf16.msra.mxu3 %v1073_v42  ;;  %492 = vmatmul.bf16.vlgmr.msra.gmra.mxu0 %v1442_v53  ;;  %v1241_v24 = vld [vmem:[#allocation6 + $0x174] sm:$0xf0]  ;;  %v998_v26 = vld [vmem:[#allocation6 + $0x78] sm:$0xf0]  ;;  %v1239_v27 = vld [vmem:[#allocation6 + $0x16c] sm:$0xf]  ;;  %v997_v29 = vor.u32 %v1209_v21, %v996_v20 }
  0x36   :  { %536 = vmatpush.bf16.msrb.mxu0 %v1061_v43  ;;  %505 = vmatmul.bf16.vlgmr.msra.gmra.mxu1 %v1444_v56  ;;  %v1126_v28 = vld [vmem:[#allocation6 + $0x178] sm:$0xf0]  ;;  %v1125_v30 = vor.u32 %v1241_v24, %v1124_v22  ;;  %v1001_v31 = vor.u32 %v1207_v25, %v998_v26  ;;  %v980_v32 = vld [vmem:[#allocation6 + $0x48] sm:$0xf]  ;;  %v1205_v33 = vld [vmem:[#allocation6 + $0x54] sm:$0xf0] }
  0x37   :  { %549 = vmatpush.bf16.msrb.mxu1 %v1189_v44  ;;  %518 = vmatmul.bf16.vlgmr.msra.gmra.mxu2 %v1442_v53  ;;  %v1108_v34 = vld [vmem:[#allocation6 + $0x148] sm:$0xf]  ;;  %v1129_v35 = vor.u32 %v1239_v27, %v1126_v28  ;;  %v1237_v36 = vld [vmem:[#allocation6 + $0x154] sm:$0xf0]  ;;  %v1203_v37 = vld [vmem:[#allocation6 + $0x4c] sm:$0xf]  ;;  %v981_v41 = vor.u32 %v1205_v33, %v980_v32 }
  0x38   :  { %562 = vmatpush.bf16.msrb.mxu2 %v1065_v45  ;;  %531 = vmatmul.bf16.vlgmr.msra.gmra.mxu3 %v1444_v56  ;;  %v982_v38 = vld [vmem:[#allocation6 + $0x58] sm:$0xf0]  ;;  %v1235_v39 = vld [vmem:[#allocation6 + $0x14c] sm:$0xf]  ;;  %v1109_v42 = vor.u32 %v1237_v36, %v1108_v34  ;;  %v964_v44 = vld [vmem:[#allocation6 + $0x28] sm:$0xf] }
  0x39   :  { %575 = vmatpush.bf16.msrb.mxu3 %v1193_v49  ;;  %v1110_v40 = vld [vmem:[#allocation6 + $0x158] sm:$0xf0]  ;;  %v985_v43 = vor.u32 %v1203_v37, %v982_v38  ;;  %v1201_v45 = vld [vmem:[#allocation6 + $0x34] sm:$0xf0]  ;;  %v1092_v46 = vld [vmem:[#allocation6 + $0x128] sm:$0xf] }
  0x3a   :  { %537 = vmatpush.bf16.msrb.mxu0 %v1045_v57  ;;  %v1113_v47 = vor.u32 %v1235_v39, %v1110_v40  ;;  %v1233_v48 = vld [vmem:[#allocation6 + $0x134] sm:$0xf0]  ;;  %v1199_v49 = vld [vmem:[#allocation6 + $0x2c] sm:$0xf]  ;;  %v966_v50 = vld [vmem:[#allocation6 + $0x38] sm:$0xf0]  ;;  %v965_v54 = vor.u32 %v1201_v45, %v964_v44 }
  0x3b   :  { %550 = vmatpush.bf16.msrb.mxu1 %v1173_v58  ;;  %v1231_v51 = vld [vmem:[#allocation6 + $0x12c] sm:$0xf]  ;;  %v1094_v52 = vld [vmem:[#allocation6 + $0x138] sm:$0xf0]  ;;  %v1093_v55 = vor.u32 %v1233_v48, %v1092_v46  ;;  %v969_v57 = vor.u32 %v1199_v49, %v966_v50  ;;  %v948_v58 = vld [vmem:[#allocation6 + $0x8] sm:$0xf] }
  0x3c   :  { %563 = vmatpush.bf16.msrb.mxu2 %v1049_v59  ;;  %v1197_v59 = vld [vmem:[#allocation6 + $0x14] sm:$0xf0]  ;;  %v1076_v60 = vld [vmem:[#allocation6 + $0x108] sm:$0xf]  ;;  %v1097_v61 = vor.u32 %v1231_v51, %v1094_v52  ;;  %v950_v0 = vld [vmem:[#allocation6 + $0x18] sm:$0xf0] }
  0x3d   :  { %576 = vmatpush.bf16.msrb.mxu3 %v1177_v63  ;;  %v1229_v62 = vld [vmem:[#allocation6 + $0x114] sm:$0xf0]  ;;  %v1195_v63 = vld [vmem:[#allocation6 + $0xc] sm:$0xf]  ;;  %v1078_v2 = vld [vmem:[#allocation6 + $0x118] sm:$0xf0]  ;;  %v949_v3 = vor.u32 %v1197_v59, %v948_v58 }
  0x3e   :  { %538 = vmatpush.bf16.msrb.mxu0 %v1029_v5  ;;  %v1227_v1 = vld [vmem:[#allocation6 + $0x10c] sm:$0xf]  ;;  %v1077_v4 = vor.u32 %v1229_v62, %v1076_v60  ;;  %v953_v5 = vor.u32 %v1195_v63, %v950_v0  ;;  %v683_v8 = vld [vmem:[#allocation9 + $0x1f0] sm:$0xff]  ;;  %v649_v9 = vld [vmem:[#allocation9 + $0xe0] sm:$0xff] }
  0x3f   :  { %551 = vmatpush.bf16.msrb.mxu1 %v1157_v6  ;;  %v1081_v6 = vor.u32 %v1227_v1, %v1078_v2  ;;  %v681_v10 = vld [vmem:[#allocation9 + $0x1e0] sm:$0xff]  ;;  %v647_v12 = vld [vmem:[#allocation9 + $0xd0] sm:$0xff]  ;;  %v652_v63 = vld [vmem:[#allocation9 + $0xf8] sm:$0xff] }
  0x40   :  { %564 = vmatpush.bf16.msrb.mxu2 %v1033_v7  ;;  %v651_v7 = vld [vmem:[#allocation9 + $0xf0] sm:$0xff]  ;;  %v713_v15 = vld [vmem:[#allocation9 + $0x2e0] sm:$0xff]  ;;  %v684_v1 = vld [vmem:[#allocation9 + $0x1f8] sm:$0xff] }
  0x41   :  { %577 = vmatpush.bf16.msrb.mxu3 %v1161_v11  ;;  %v715_v11 = vld [vmem:[#allocation9 + $0x2f0] sm:$0xff]  ;;  %v645_v16 = vld [vmem:[#allocation9 + $0xc0] sm:$0xff]  ;;  %v650_v2 = vld [vmem:[#allocation9 + $0xe8] sm:$0xff] }
  0x42   :  { %539 = vmatpush.bf16.msrb.mxu0 %v1013_v17  ;;  %v747_v13 = vld [vmem:[#allocation9 + $0x3f0] sm:$0xff]  ;;  %v745_v17 = vld [vmem:[#allocation9 + $0x3e0] sm:$0xff] }
  0x43   :  { %552 = vmatpush.bf16.msrb.mxu1 %v1141_v18  ;;  %v679_v14 = vld [vmem:[#allocation9 + $0x1d0] sm:$0xff]  ;;  %v677_v18 = vld [vmem:[#allocation9 + $0x1c0] sm:$0xff] }
  0x44   :  { %565 = vmatpush.bf16.msrb.mxu2 %v1017_v19  ;;  %v711_v19 = vld [vmem:[#allocation9 + $0x2d0] sm:$0xff]  ;;  %v709_v22 = vld [vmem:[#allocation9 + $0x2c0] sm:$0xff] }
  0x45   :  { %578 = vmatpush.bf16.msrb.mxu3 %v1145_v23  ;;  %v643_v20 = vld [vmem:[#allocation9 + $0xb0] sm:$0xff]  ;;  %v741_v23 = vld [vmem:[#allocation9 + $0x3c0] sm:$0xff] }
  0x46   :  { %540 = vmatpush.bf16.msrb.mxu0 %v997_v29  ;;  %v743_v21 = vld [vmem:[#allocation9 + $0x3d0] sm:$0xff]  ;;  %v673_v24 = vld [vmem:[#allocation9 + $0x1a0] sm:$0xff] }
  0x47   :  { %553 = vmatpush.bf16.msrb.mxu1 %v1125_v30  ;;  %v707_v25 = vld [vmem:[#allocation9 + $0x2b0] sm:$0xff]  ;;  %v705_v29 = vld [vmem:[#allocation9 + $0x2a0] sm:$0xff] }
  0x48   :  { %566 = vmatpush.bf16.msrb.mxu2 %v1001_v31  ;;  %v639_v26 = vld [vmem:[#allocation9 + $0x90] sm:$0xff]  ;;  %v637_v30 = vld [vmem:[#allocation9 + $0x80] sm:$0xff] }
  0x49   :  { %579 = vmatpush.bf16.msrb.mxu3 %v1129_v35  ;;  %v739_v27 = vld [vmem:[#allocation9 + $0x3b0] sm:$0xff]  ;;  %v737_v31 = vld [vmem:[#allocation9 + $0x3a0] sm:$0xff] }
  0x4a   :  { %541 = vmatpush.bf16.msrb.mxu0 %v981_v41  ;;  %v671_v28 = vld [vmem:[#allocation9 + $0x190] sm:$0xff]  ;;  %v669_v32 = vld [vmem:[#allocation9 + $0x180] sm:$0xff] }
  0x4b   :  { %554 = vmatpush.bf16.msrb.mxu1 %v1109_v42  ;;  %v703_v33 = vld [vmem:[#allocation9 + $0x290] sm:$0xff]  ;;  %v701_v37 = vld [vmem:[#allocation9 + $0x280] sm:$0xff] }
  0x4c   :  { %567 = vmatpush.bf16.msrb.mxu2 %v985_v43  ;;  %v635_v34 = vld [vmem:[#allocation9 + $0x70] sm:$0xff]  ;;  %v633_v38 = vld [vmem:[#allocation9 + $0x60] sm:$0xff] }
  0x4d   :  { %580 = vmatpush.bf16.msrb.mxu3 %v1113_v47  ;;  %v735_v35 = vld [vmem:[#allocation9 + $0x390] sm:$0xff]  ;;  %v733_v39 = vld [vmem:[#allocation9 + $0x380] sm:$0xff] }
  0x4e   :  { %542 = vmatpush.bf16.msrb.mxu0 %v965_v54  ;;  %v667_v36 = vld [vmem:[#allocation9 + $0x170] sm:$0xff]  ;;  %v665_v40 = vld [vmem:[#allocation9 + $0x160] sm:$0xff] }
  0x4f   :  { %555 = vmatpush.bf16.msrb.mxu1 %v1093_v55  ;;  %v699_v41 = vld [vmem:[#allocation9 + $0x270] sm:$0xff]  ;;  %v697_v45 = vld [vmem:[#allocation9 + $0x260] sm:$0xff] }
  0x50   :  { %568 = vmatpush.bf16.msrb.mxu2 %v969_v57  ;;  %v631_v42 = vld [vmem:[#allocation9 + $0x50] sm:$0xff]  ;;  %v629_v46 = vld [vmem:[#allocation9 + $0x40] sm:$0xff] }
  0x51   :  { %581 = vmatpush.bf16.msrb.mxu3 %v1097_v61  ;;  %v731_v43 = vld [vmem:[#allocation9 + $0x370] sm:$0xff]  ;;  %v729_v47 = vld [vmem:[#allocation9 + $0x360] sm:$0xff] }
  0x52   :  { %543 = vmatpush.bf16.msrb.mxu0 %v949_v3  ;;  %v663_v44 = vld [vmem:[#allocation9 + $0x150] sm:$0xff]  ;;  %v661_v48 = vld [vmem:[#allocation9 + $0x140] sm:$0xff]  ;;  %v682_v3 = vld [vmem:[#allocation9 + $0x1e8] sm:$0xff] }
  0x53   :  { %556 = vmatpush.bf16.msrb.mxu1 %v1077_v4  ;;  %v695_v49 = vld [vmem:[#allocation9 + $0x250] sm:$0xff]  ;;  %v693_v54 = vld [vmem:[#allocation9 + $0x240] sm:$0xff]  ;;  %v648_v4 = vld [vmem:[#allocation9 + $0xd8] sm:$0xff] }
  0x54   :  { %569 = vmatpush.bf16.msrb.mxu2 %v953_v5  ;;  %v627_v50 = vld [vmem:[#allocation9 + $0x30] sm:$0xff]  ;;  %v625_v55 = vld [vmem:[#allocation9 + $0x20] sm:$0xff]  ;;  %v680_v5 = vld [vmem:[#allocation9 + $0x1d8] sm:$0xff] }
  0x55   :  { %582 = vmatpush.bf16.msrb.mxu3 %v1081_v6  ;;  %544 = vmatmul.bf16.vlgmr.msrb.gmra.mxu0 %v1442_v53  ;;  %v727_v51 = vld [vmem:[#allocation9 + $0x350] sm:$0xff]  ;;  %v657_v57 = vld [vmem:[#allocation9 + $0x120] sm:$0xff]  ;;  %v646_v6 = vld [vmem:[#allocation9 + $0xc8] sm:$0xff] }
  0x56   :  { %755 = vmatpush.msra.mxu0 %v651_v7  ;;  %557 = vmatmul.bf16.vlgmr.msrb.gmra.mxu1 %v1444_v56  ;;  %v659_v52 = vld [vmem:[#allocation9 + $0x130] sm:$0xff]  ;;  %v689_v61 = vld [vmem:[#allocation9 + $0x220] sm:$0xff]  ;;  %v678_v7 = vld [vmem:[#allocation9 + $0x1c8] sm:$0xff] }
  0x57   :  { %775 = vmatpush.msra.mxu1 %v683_v8  ;;  %570 = vmatmul.bf16.vlgmr.msrb.gmra.mxu2 %v1442_v53  ;;  %v675_v53 = vld [vmem:[#allocation9 + $0x1b0] sm:$0xff]  ;;  %v621_v62 = vld [vmem:[#allocation9] sm:$0xff]  ;;  %v644_v8 = vld [vmem:[#allocation9 + $0xb8] sm:$0xff] }
  0x58   :  { %583 = vmatmul.bf16.vlgmr.msrb.gmra.mxu3 %v1444_v56  ;;  %756 = vmatpush.msra.mxu0 %v649_v9  ;;  %v641_v56 = vld [vmem:[#allocation9 + $0xa0] sm:$0xff]  ;;  %v691_v58 = vld [vmem:[#allocation9 + $0x230] sm:$0xff]  ;;  %v676_v9 = vld [vmem:[#allocation9 + $0x1b8] sm:$0xff] }
  0x59   :  { %776 = vmatpush.msra.mxu1 %v681_v10  ;;  %795 = vmatpush.msra.mxu2 %v715_v11  ;;  %v623_v59 = vld [vmem:[#allocation9 + $0x10] sm:$0xff]  ;;  %v653_v0 = vld [vmem:[#allocation9 + $0x100] sm:$0xff]  ;;  %v642_v10 = vld [vmem:[#allocation9 + $0xa8] sm:$0xff] }
  0x5a   :  { %757 = vmatpush.msra.mxu0 %v647_v12  ;;  %815 = vmatpush.msra.mxu3 %v747_v13  ;;  %v655_v60 = vld [vmem:[#allocation9 + $0x110] sm:$0xff]  ;;  %v674_v11 = vld [vmem:[#allocation9 + $0x1a8] sm:$0xff]  ;;  %v640_v12 = vld [vmem:[#allocation9 + $0x98] sm:$0xff] }
  0x5b   :  { %777 = vmatpush.msra.mxu1 %v679_v14  ;;  %796 = vmatpush.msra.mxu2 %v713_v15  ;;  %v672_v13 = vld [vmem:[#allocation9 + $0x198] sm:$0xff]  ;;  %v638_v14 = vld [vmem:[#allocation9 + $0x88] sm:$0xff] }
  0x5c   :  { %758 = vmatpush.msra.mxu0 %v645_v16  ;;  %816 = vmatpush.msra.mxu3 %v745_v17  ;;  %v636_v15 = vld [vmem:[#allocation9 + $0x78] sm:$0xff]  ;;  %v670_v16 = vld [vmem:[#allocation9 + $0x188] sm:$0xff]  ;;  %v687_v17 = vld [vmem:[#allocation9 + $0x210] sm:$0xff] }
  0x5d   :  { %778 = vmatpush.msra.mxu1 %v677_v18  ;;  %797 = vmatpush.msra.mxu2 %v711_v19  ;;  %v725_v18 = vld [vmem:[#allocation9 + $0x340] sm:$0xff]  ;;  %v634_v19 = vld [vmem:[#allocation9 + $0x68] sm:$0xff] }
  0x5e   :  { %759 = vmatpush.msra.mxu0 %v643_v20  ;;  %817 = vmatpush.msra.mxu3 %v743_v21  ;;  %v668_v20 = vld [vmem:[#allocation9 + $0x178] sm:$0xff]  ;;  %v685_v21 = vld [vmem:[#allocation9 + $0x200] sm:$0xff] }
  0x5f   :  { %779 = vmatpush.msra.mxu1 %v675_v53  ;;  %798 = vmatpush.msra.mxu2 %v709_v22  ;;  %v723_v53 = vld [vmem:[#allocation9 + $0x330] sm:$0xff]  ;;  %v632_v22 = vld [vmem:[#allocation9 + $0x58] sm:$0xff] }
  0x60   :  { %760 = vmatpush.msra.mxu0 %v641_v56  ;;  %818 = vmatpush.msra.mxu3 %v741_v23  ;;  %v666_v56 = vld [vmem:[#allocation9 + $0x168] sm:$0xff]  ;;  %v716_v23 = vld [vmem:[#allocation9 + $0x2f8] sm:$0xff] }
  0x61   :  { %780 = vmatpush.msra.mxu1 %v673_v24  ;;  %799 = vmatpush.msra.mxu2 %v707_v25  ;;  %v721_v24 = vld [vmem:[#allocation9 + $0x320] sm:$0xff]  ;;  %v630_v25 = vld [vmem:[#allocation9 + $0x48] sm:$0xff] }
  0x62   :  { %761 = vmatpush.msra.mxu0 %v639_v26  ;;  %819 = vmatpush.msra.mxu3 %v739_v27  ;;  %v664_v26 = vld [vmem:[#allocation9 + $0x158] sm:$0xff]  ;;  %v714_v27 = vld [vmem:[#allocation9 + $0x2e8] sm:$0xff] }
  0x63   :  { %781 = vmatpush.msra.mxu1 %v671_v28  ;;  %800 = vmatpush.msra.mxu2 %v705_v29  ;;  %v719_v28 = vld [vmem:[#allocation9 + $0x310] sm:$0xff]  ;;  %v628_v29 = vld [vmem:[#allocation9 + $0x38] sm:$0xff] }
  0x64   :  { %762 = vmatpush.msra.mxu0 %v637_v30  ;;  %820 = vmatpush.msra.mxu3 %v737_v31  ;;  %v662_v30 = vld [vmem:[#allocation9 + $0x148] sm:$0xff]  ;;  %v712_v31 = vld [vmem:[#allocation9 + $0x2d8] sm:$0xff] }
  0x65   :  { %782 = vmatpush.msra.mxu1 %v669_v32  ;;  %801 = vmatpush.msra.mxu2 %v703_v33  ;;  %v717_v32 = vld [vmem:[#allocation9 + $0x300] sm:$0xff]  ;;  %v626_v33 = vld [vmem:[#allocation9 + $0x28] sm:$0xff] }
  0x66   :  { %763 = vmatpush.msra.mxu0 %v635_v34  ;;  %821 = vmatpush.msra.mxu3 %v735_v35  ;;  %v660_v34 = vld [vmem:[#allocation9 + $0x138] sm:$0xff]  ;;  %v710_v35 = vld [vmem:[#allocation9 + $0x2c8] sm:$0xff] }
  0x67   :  { %783 = vmatpush.msra.mxu1 %v667_v36  ;;  %802 = vmatpush.msra.mxu2 %v701_v37  ;;  %v748_v36 = vld [vmem:[#allocation9 + $0x3f8] sm:$0xff] }
  0x68   :  { %764 = vmatpush.msra.mxu0 %v633_v38  ;;  %822 = vmatpush.msra.mxu3 %v733_v39  ;;  %v624_v37 = vld [vmem:[#allocation9 + $0x18] sm:$0xff]  ;;  %v658_v38 = vld [vmem:[#allocation9 + $0x128] sm:$0xff] }
  0x69   :  { %784 = vmatpush.msra.mxu1 %v665_v40  ;;  %803 = vmatpush.msra.mxu2 %v699_v41  ;;  %v708_v39 = vld [vmem:[#allocation9 + $0x2b8] sm:$0xff]  ;;  %v746_v40 = vld [vmem:[#allocation9 + $0x3e8] sm:$0xff] }
  0x6a   :  { %765 = vmatpush.msra.mxu0 %v631_v42  ;;  %823 = vmatpush.msra.mxu3 %v731_v43  ;;  %v622_v41 = vld [vmem:[#allocation9 + $0x8] sm:$0xff]  ;;  %v656_v42 = vld [vmem:[#allocation9 + $0x118] sm:$0xff] }
  0x6b   :  { %785 = vmatpush.msra.mxu1 %v663_v44  ;;  %804 = vmatpush.msra.mxu2 %v697_v45  ;;  %v706_v43 = vld [vmem:[#allocation9 + $0x2a8] sm:$0xff]  ;;  %v744_v44 = vld [vmem:[#allocation9 + $0x3d8] sm:$0xff] }
  0x6c   :  { %766 = vmatpush.msra.mxu0 %v629_v46  ;;  %824 = vmatpush.msra.mxu3 %v729_v47  ;;  %v654_v45 = vld [vmem:[#allocation9 + $0x108] sm:$0xff]  ;;  %v704_v46 = vld [vmem:[#allocation9 + $0x298] sm:$0xff] }
  0x6d   :  { %786 = vmatpush.msra.mxu1 %v661_v48  ;;  %805 = vmatpush.msra.mxu2 %v695_v49  ;;  %v742_v47 = vld [vmem:[#allocation9 + $0x3c8] sm:$0xff]  ;;  %v740_v49 = vld [vmem:[#allocation9 + $0x3b8] sm:$0xff] }
  0x6e   :  { %767 = vmatpush.msra.mxu0 %v627_v50  ;;  %825 = vmatpush.msra.mxu3 %v727_v51  ;;  %v702_v48 = vld [vmem:[#allocation9 + $0x288] sm:$0xff]  ;;  %v1454_v50 = vld [vmem:[#allocation8] sm:$0xf] }
  0x6f   :  { %787 = vmatpush.msra.mxu1 %v659_v52  ;;  %806 = vmatpush.msra.mxu2 %v693_v54  ;;  %v700_v51 = vld [vmem:[#allocation9 + $0x278] sm:$0xff]  ;;  %v738_v52 = vld [vmem:[#allocation9 + $0x3a8] sm:$0xff] }
  0x70   :  { %768 = vmatpush.msra.mxu0 %v625_v55  ;;  %826 = vmatpush.msra.mxu3 %v725_v18  ;;  %v698_v54 = vld [vmem:[#allocation9 + $0x268] sm:$0xff]  ;;  %v736_v55 = vld [vmem:[#allocation9 + $0x398] sm:$0xff] }
  0x71   :  { %788 = vmatpush.msra.mxu1 %v657_v57  ;;  %807 = vmatpush.msra.mxu2 %v691_v58  ;;  %v605_v58 = vperm.slane %v1454_v50, 0  ;;  %v724_v18 = vld [vmem:[#allocation9 + $0x338] sm:$0xff] }
  0x72   :  { %769 = vmatpush.msra.mxu0 %v623_v59  ;;  %827 = vmatpush.msra.mxu3 %v723_v53  ;;  %v720_v53 = vld [vmem:[#allocation9 + $0x318] sm:$0xff] }
  0x73   :  { %789 = vmatpush.msra.mxu1 %v655_v60  ;;  %808 = vmatpush.msra.mxu2 %v689_v61  ;;  %v696_v60 = vld [vmem:[#allocation9 + $0x258] sm:$0xff]  ;;  %v734_v61 = vld [vmem:[#allocation9 + $0x388] sm:$0xff] }
  0x74   :  { %770 = vmatpush.msra.mxu0 %v621_v62  ;;  %828 = vmatpush.msra.mxu3 %v721_v24 }
  0x75   :  { %790 = vmatpush.msra.mxu1 %v653_v0  ;;  %809 = vmatpush.msra.mxu2 %v687_v17  ;;  %v732_v0 = vld [vmem:[#allocation9 + $0x378] sm:$0xff]  ;;  %v686_v17 = vld [vmem:[#allocation9 + $0x208] sm:$0xff] }
  0x76   :  { %835 = vmatpush.msrb.mxu0 %v652_v63  ;;  %829 = vmatpush.msra.mxu3 %v719_v28  ;;  %v694_v63 = vld [vmem:[#allocation9 + $0x248] sm:$0xff] }
  0x77   :  { %855 = vmatpush.msrb.mxu1 %v684_v1  ;;  %810 = vmatpush.msra.mxu2 %v685_v21 }
  0x78   :  { %836 = vmatpush.msrb.mxu0 %v650_v2  ;;  %830 = vmatpush.msra.mxu3 %v717_v32 }
  0x79   :  { %856 = vmatpush.msrb.mxu1 %v682_v3  ;;  %875 = vmatpush.msrb.mxu2 %v716_v23  ;;  %v606_v3 = vperm.slane %v1454_v50, 1  ;;  %v607_v23 = vperm.slane %v1454_v50, 2 }
  0x7a   :  { %837 = vmatpush.msrb.mxu0 %v648_v4  ;;  %895 = vmatpush.msrb.mxu3 %v748_v36  ;;  %v692_v4 = vld [vmem:[#allocation9 + $0x238] sm:$0xff] }
  0x7b   :  { %857 = vmatpush.msrb.mxu1 %v680_v5  ;;  %876 = vmatpush.msrb.mxu2 %v714_v27  ;;  %v730_v5 = vld [vmem:[#allocation9 + $0x368] sm:$0xff] }
  0x7c   :  { %838 = vmatpush.msrb.mxu0 %v646_v6  ;;  %896 = vmatpush.msrb.mxu3 %v746_v40 }
  0x7d   :  { %858 = vmatpush.msrb.mxu1 %v678_v7  ;;  %877 = vmatpush.msrb.mxu2 %v712_v31 }
  0x7e   :  { %839 = vmatpush.msrb.mxu0 %v644_v8  ;;  %897 = vmatpush.msrb.mxu3 %v744_v44 }
  0x7f   :  { %859 = vmatpush.msrb.mxu1 %v676_v9  ;;  %878 = vmatpush.msrb.mxu2 %v710_v35  ;;  %v690_v9 = vld [vmem:[#allocation9 + $0x228] sm:$0xff] }
  0x80   :  { %840 = vmatpush.msrb.mxu0 %v642_v10  ;;  %898 = vmatpush.msrb.mxu3 %v742_v47  ;;  %v728_v10 = vld [vmem:[#allocation9 + $0x358] sm:$0xff] }
  0x81   :  { %860 = vmatpush.msrb.mxu1 %v674_v11  ;;  %879 = vmatpush.msrb.mxu2 %v708_v39 }
  0x82   :  { %841 = vmatpush.msrb.mxu0 %v640_v12  ;;  %899 = vmatpush.msrb.mxu3 %v740_v49 }
  0x83   :  { %861 = vmatpush.msrb.mxu1 %v672_v13  ;;  %880 = vmatpush.msrb.mxu2 %v706_v43 }
  0x84   :  { %842 = vmatpush.msrb.mxu0 %v638_v14  ;;  %900 = vmatpush.msrb.mxu3 %v738_v52  ;;  %v688_v14 = vld [vmem:[#allocation9 + $0x218] sm:$0xff] }
  0x85   :  { %862 = vmatpush.msrb.mxu1 %v670_v16  ;;  %881 = vmatpush.msrb.mxu2 %v704_v46 }
  0x86   :  { %843 = vmatpush.msrb.mxu0 %v636_v15  ;;  %901 = vmatpush.msrb.mxu3 %v736_v55  ;;  %v726_v15 = vld [vmem:[#allocation9 + $0x348] sm:$0xff] }
  0x87   :  { %863 = vmatpush.msrb.mxu1 %v668_v20  ;;  %882 = vmatpush.msrb.mxu2 %v702_v48  ;;  %v722_v20 = vld [vmem:[#allocation9 + $0x328] sm:$0xff] }
  0x88   :  { %844 = vmatpush.msrb.mxu0 %v634_v19  ;;  %902 = vmatpush.msrb.mxu3 %v734_v61 }
  0x89   :  { %864 = vmatpush.msrb.mxu1 %v666_v56  ;;  %883 = vmatpush.msrb.mxu2 %v700_v51 }
  0x8a   :  { %845 = vmatpush.msrb.mxu0 %v632_v22  ;;  %903 = vmatpush.msrb.mxu3 %v732_v0  ;;  %v718_v22 = vld [vmem:[#allocation9 + $0x308] sm:$0xff] }
  0x8b   :  { %865 = vmatpush.msrb.mxu1 %v664_v26  ;;  %884 = vmatpush.msrb.mxu2 %v698_v54 }
  0x8c   :  { %846 = vmatpush.msrb.mxu0 %v630_v25  ;;  %904 = vmatpush.msrb.mxu3 %v730_v5 }
  0x8d   :  { %866 = vmatpush.msrb.mxu1 %v662_v30  ;;  %885 = vmatpush.msrb.mxu2 %v696_v60 }
  0x8e   :  { %847 = vmatpush.msrb.mxu0 %v628_v29  ;;  %905 = vmatpush.msrb.mxu3 %v728_v10  ;;  %v608_v29 = vperm.slane %v1454_v50, 3 }
  0x8f   :  { %867 = vmatpush.msrb.mxu1 %v660_v34  ;;  %886 = vmatpush.msrb.mxu2 %v694_v63 }
  0x90   :  { %848 = vmatpush.msrb.mxu0 %v626_v33  ;;  %906 = vmatpush.msrb.mxu3 %v726_v15 }
  0x91   :  { %868 = vmatpush.msrb.mxu1 %v658_v38  ;;  %887 = vmatpush.msrb.mxu2 %v692_v4  ;;  %v749_v38 = vld [vmem:[%s1470_s4] sm:$0x3]  ;;  %s1399_s4 = smov [#allocation11]  }
  0x92   :  { %849 = vmatpush.msrb.mxu0 %v624_v37  ;;  %907 = vmatpush.msrb.mxu3 %v724_v18  ;;  %v751_v40 = vperm.slane %v749_v38, 0  ;;  %s924_s13 = sshll.u32 %s1399_s4, 4  ;;  %s925_s13 = int_to_ptr.vmem [resolvable:$true] %s924_s13 }
  0x93   :  { %869 = vmatpush.msrb.mxu1 %v656_v42  ;;  %888 = vmatpush.msrb.mxu2 %v690_v9 }
  0x94   :  { %850 = vmatpush.msrb.mxu0 %v622_v41  ;;  %908 = vmatpush.msrb.mxu3 %v722_v20 }
  0x95   :  { %870 = vmatpush.msrb.mxu1 %v654_v45  ;;  %889 = vmatpush.msrb.mxu2 %v688_v14  ;;  %v752_v45 = vperm.slane %v749_v38, 1 }
  0x96   :  { %909 = vmatpush.msrb.mxu3 %v720_v53 }
  0x97   :  { %890 = vmatpush.msrb.mxu2 %v686_v17 }
  0x98   :  { %910 = vmatpush.msrb.mxu3 %v718_v22 }
  0xb2   :  { %v493_v57 = vpop.f32.mrf.mxu0 }
  0xb3   :  { %v506_v59 = vpop.f32.mrf.mxu1 }
  0xb4   :  { %v507_v62 = vadd.f32 %v506_v59, %v493_v57 }
  0xb6   :  { %v613_v1 = vadd.f32 %v605_v58, %v507_v62 }
  0xb8   :  { %v617_v6 = vmax.f32 %v613_v1, 0.0 }
  0xba   :  { %v519_v2 = vpop.f32.mrf.mxu2  ;;  %771 = vmatmul.f32.vlgmr.msra.gmra.mxu0 %v617_v6  ;;  %v495_v11 = vpop.f32.mrf.mxu0 }
  0xbb   :  { %v532_v7 = vpop.f32.mrf.mxu3  ;;  %v508_v13 = vpop.f32.mrf.mxu1 }
  0xbc   :  { %v533_v8 = vadd.f32 %v532_v7, %v519_v2 }
  0xbe   :  { %v614_v12 = vadd.f32 %v606_v3, %v533_v8 }
  0xc0   :  { %v618_v16 = vmax.f32 %v614_v12, 0.0 }
  0xc2   :  { %791 = vmatmul.f32.vlgmr.msra.gmra.mxu1 %v618_v16  ;;  %v521_v19 = vpop.f32.mrf.mxu2  ;;  %851 = vmatmul.f32.vlgmr.msrb.gmra.mxu0 %v617_v6 }
  0xc3   :  { %v534_v21 = vpop.f32.mrf.mxu3 }
  0xca   :  { %871 = vmatmul.f32.vlgmr.msrb.gmra.mxu1 %v618_v16 }
  0xd2   :  { %v545_v56 = vpop.f32.mrf.mxu0 }
  0xd3   :  { %v558_v24 = vpop.f32.mrf.mxu1 }
  0xd4   :  { %v559_v25 = vadd.f32 %v558_v24, %v545_v56 }
  0xd6   :  { %v615_v26 = vadd.f32 %v607_v23, %v559_v25 }
  0xd8   :  { %v619_v27 = vmax.f32 %v615_v26, 0.0 }
  0xda   :  { %v571_v28 = vpop.f32.mrf.mxu2  ;;  %811 = vmatmul.f32.vlgmr.msra.gmra.mxu2 %v619_v27  ;;  %v547_v31 = vpop.f32.mrf.mxu0 }
  0xdb   :  { %v584_v30 = vpop.f32.mrf.mxu3  ;;  %v560_v33 = vpop.f32.mrf.mxu1 }
  0xdc   :  { %v585_v32 = vadd.f32 %v584_v30, %v571_v28 }
  0xde   :  { %v616_v34 = vadd.f32 %v608_v29, %v585_v32 }
  0xe0   :  { %v620_v35 = vmax.f32 %v616_v34, 0.0 }
  0xe2   :  { %831 = vmatmul.f32.vlgmr.msra.gmra.mxu3 %v620_v35  ;;  %v573_v36 = vpop.f32.mrf.mxu2  ;;  %891 = vmatmul.f32.vlgmr.msrb.gmra.mxu2 %v619_v27 }
  0xe3   :  { %v586_v37 = vpop.f32.mrf.mxu3 }
  0xea   :  { %911 = vmatmul.f32.vlgmr.msrb.gmra.mxu3 %v620_v35 }
 0x137   :  { %v772_v39 = vpop.f32.mrf.mxu0 }
 0x138   :  { %v773_v42 = vadd.f32 %v772_v39, %v751_v40 }
 0x13f   :  { %v792_v41 = vpop.f32.mrf.mxu1  ;;  %v852_v46 = vpop.f32.mrf.mxu0 }
 0x140   :  { %v793_v44 = vadd.f32 %v792_v41, %v773_v42  ;;  %v853_v49 = vadd.f32 %v852_v46, %v752_v45 }
 0x147   :  { %v872_v51 = vpop.f32.mrf.mxu1 }
 0x148   :  { %v873_v55 = vadd.f32 %v872_v51, %v853_v49 }
 0x15d   :  { %v812_v43 = vpop.f32.mrf.mxu2 }
 0x15e   :  { %v813_v47 = vadd.f32 %v812_v43, %v793_v44 }
 0x165   :  { %v832_v48 = vpop.f32.mrf.mxu3  ;;  %v892_v54 = vpop.f32.mrf.mxu2 }
 0x166   :  { %v833_v50 = vadd.f32 %v832_v48, %v813_v47  ;;  %v893_v57 = vadd.f32 %v892_v54, %v873_v55 }
 0x168   :  { %v915_v52 = vmax.f32 %v833_v50, 0.0 }
 0x16a   :  { %917 = vst [vmem:[#allocation11] sm:$0xff] %v915_v52 }
 0x16d   :  { %v912_v58 = vpop.f32.mrf.mxu3 }
 0x16e   :  { %v913_v59 = vadd.f32 %v912_v58, %v893_v57 }
 0x170   :  { %v916_v60 = vmax.f32 %v913_v59, 0.0 }
 0x172   :  { %918 = vst [vmem:[#allocation11 + $0x8] sm:$0xff] %v916_v60 }
 0x173   :  { %929 = dma.vmem_to_hbm [thread:$0]  %s925_s13, 256, %s927_s16, [#allocation5]  }
 0x174   :  { %1391 = dma.done.wait [#allocation5], 256  }
 0x175   :  { %1392 = vsyncadd [#allocation5], 4294967040 }
 0x176   :  { %934 = vsyncpa [#allocation4], 1 }
 0x177   :  { %935 = vsyncpa [#allocation7], 1 }
 0x178   :  { %936 = vsyncpa [#allocation10], 1 }
 0x179   :  { %937 = vsyncpa [#allocation5], 1 }

</bundles_post_ra>
